<compile_context>
chip_gen: v7x
topology: tpu7x:2x2x1
jax: 0.10.0
libtpu: 0.0.40
codegen_flags: <defaults>
</compile_context>

<pallas_src>
import jax
import jax.numpy as jnp
from jax.experimental import pallas as pl
from jax.experimental.pallas import tpu as pltpu

INPUT_SIZE = 784
HIDDEN = 50
HIDDEN_PAD = 128          # lane-dense hidden width
NUM_CLASSES = 10
CLASS_PAD = 128           # lane-dense output width
NEG_BIG = -1e30           # bias for padded class columns -> exp() == 0

_VMEM_TILE_BUDGET = 28 * 1024 * 1024   # double-buffered tile budget (< 32 MiB scoped limit)


def _round_up(n, m):
    return (n + m - 1) // m * m


def _pick_tile_b(batch, requested, x_itemsize):
    """Clamp the batch tile so double-buffered x/out tiles fit the VMEM budget
    (keeps headroom on v7x's 64 MiB physical VMEM) and stay sublane-aligned."""
    if requested is None:
        requested = 4096 if x_itemsize <= 2 else 2048
    # per-row bytes with double buffering: 2 * x tile + 2 * f32 out tile
    bytes_per_row = 2 * INPUT_SIZE * x_itemsize + 2 * CLASS_PAD * 4
    cap = _VMEM_TILE_BUDGET // bytes_per_row
    tile = min(requested, cap, _round_up(batch, 16))
    tile = max(16, (tile // 16) * 16)   # multiple of 16: bf16-friendly sublanes
    return tile


def mlp_kernel(x_ref, w1_ref, b1_ref, w2_ref, b2_ref, o_ref):
    # Cast the streamed tile to bf16 in VMEM (no extra HBM pass); fc1 on the
    # MXU with f32 accumulation, bias + ReLU in f32.
    x = x_ref[...].astype(jnp.bfloat16)
    h = jnp.dot(x, w1_ref[...], preferred_element_type=jnp.float32)
    h = jnp.maximum(h + b1_ref[...], 0.0)                      # (tile_b, 128)

    # fc2: bf16 x bf16 (MXU-native on v5e), f32 accumulation. Padded hidden
    # columns are exactly 0 -> no effect.
    logits = jnp.dot(h.astype(jnp.bfloat16), w2_ref[...],
                     preferred_element_type=jnp.float32) + b2_ref[...]   # (tile_b, 128)

    # Max-stabilized softmax. Padded class columns carry bias -1e30, so after
    # subtracting the (finite, real-class) max their exp underflows to 0 and
    # they do not perturb the denominator.
    m = jnp.max(logits, axis=-1, keepdims=True)
    e = jnp.exp(logits - m)
    denom = jnp.sum(e, axis=-1, keepdims=True)                 # >= 1.0 always
    r = pl.reciprocal(denom, approx=True)                      # EUP slot
    r = r * (2.0 - denom * r)                                  # one Newton step -> ~f32 accuracy
    o_ref[...] = (e * r).astype(o_ref.dtype)


def nn_forward_padded(x, w1p, b1p, w2p, b2p, *, tile_b=None, out_dtype=jnp.float32):
    """x: (B, 784) f32 or bf16 (bf16 halves the x HBM read). Padded params from
    pad_params(). Returns the lane-dense (B, 128) probability slab; columns
    [0, 10) are the real classes, the rest are exactly 0. Fuse argmax / loss on
    this slab to avoid a second full-slab HBM pass."""
    B = x.shape[0]
    tile = _pick_tile_b(B, tile_b, jnp.dtype(x.dtype).itemsize)
    grid = (pl.cdiv(B, tile),)   # ragged last block: OOB reads padded, OOB writes masked

    return pl.pallas_call(
        mlp_kernel,
        out_shape=jax.ShapeDtypeStruct((B, CLASS_PAD), out_dtype),
        grid=grid,
        in_specs=[
            pl.BlockSpec((tile, INPUT_SIZE), lambda i: (i, 0)),        # x tile (pipelined)
            pl.BlockSpec((INPUT_SIZE, HIDDEN_PAD), lambda i: (0, 0)),  # w1, VMEM-resident
            pl.BlockSpec((1, HIDDEN_PAD), lambda i: (0, 0)),           # b1
            pl.BlockSpec((HIDDEN_PAD, CLASS_PAD), lambda i: (0, 0)),   # w2
            pl.BlockSpec((1, CLASS_PAD), lambda i: (0, 0)),            # b2
        ],
        out_specs=pl.BlockSpec((tile, CLASS_PAD), lambda i: (i, 0)),
        compiler_params=pltpu.CompilerParams(
            dimension_semantics=("parallel",),       # megacore sharding on v7x
            vmem_limit_bytes=32 * 1024 * 1024,       # tiles budgeted to <28 MiB above
        ),
    )(x, w1p, b1p, w2p, b2p)


def nn_forward(x, w1p, b1p, w2p, b2p, *, tile_b=None):
    """Module-equivalent output: softmax probabilities (B, 10)."""
    out = nn_forward_padded(x, w1p, b1p, w2p, b2p, tile_b=tile_b)
    return out[:, :NUM_CLASSES]


def init_params(key):
    """Deterministic init mimicking torch.nn.Linear (U[-1/sqrt(fan_in), ...]).
    Weights stored pre-transposed as (in, out)."""
    k1, k2, k3, k4 = jax.random.split(key, 4)
    bound1 = 1.0 / (INPUT_SIZE ** 0.5)
    bound2 = 1.0 / (HIDDEN ** 0.5)
    w1 = jax.random.uniform(k1, (INPUT_SIZE, HIDDEN), jnp.float32, -bound1, bound1)
    b1 = jax.random.uniform(k2, (1, HIDDEN), jnp.float32, -bound1, bound1)
    w2 = jax.random.uniform(k3, (HIDDEN, NUM_CLASSES), jnp.float32, -bound2, bound2)
    b2 = jax.random.uniform(k4, (1, NUM_CLASSES), jnp.float32, -bound2, bound2)
    return w1, b1, w2, b2


def pad_params(w1, b1, w2, b2):
    """One-time lane padding: hidden -> 128, classes -> 128.
    Padded hidden columns are zero (ReLU(0)=0, contribute nothing to fc2);
    padded class columns get bias -1e30 so softmax ignores them exactly."""
    w1p = jnp.zeros((INPUT_SIZE, HIDDEN_PAD), jnp.bfloat16)
    w1p = w1p.at[:, :HIDDEN].set(w1.astype(jnp.bfloat16))
    b1p = jnp.zeros((1, HIDDEN_PAD), jnp.float32).at[:, :HIDDEN].set(b1)
    w2p = jnp.zeros((HIDDEN_PAD, CLASS_PAD), jnp.bfloat16)
    w2p = w2p.at[:HIDDEN, :NUM_CLASSES].set(w2.astype(jnp.bfloat16))
    b2p = jnp.full((1, CLASS_PAD), NEG_BIG, jnp.float32)
    b2p = b2p.at[:, :NUM_CLASSES].set(b2)
    return w1p, b1p, w2p, b2p


def _reference(x, w1, b1, w2, b2):
    h = jnp.maximum(x @ w1 + b1, 0.0)
    return jax.nn.softmax(h @ w2 + b2, axis=-1)


if __name__ == "__main__":
    key = jax.random.PRNGKey(0)
    kx, kx2, kp = jax.random.split(key, 3)

    w1, b1, w2, b2 = init_params(kp)
    w1p, b1p, w2p, b2p = pad_params(w1, b1, w2, b2)

    # Test 1: tiny batch (single partial block, tile > B).
    B = 8
    x = jax.random.normal(kx, (B, INPUT_SIZE), jnp.float32)
    out = jax.block_until_ready(nn_forward(x, w1p, b1p, w2p, b2p))
    ref = _reference(x, w1, b1, w2, b2)
    assert out.shape == (B, NUM_CLASSES)
    assert bool(jnp.all(jnp.isfinite(out)))
    assert jnp.allclose(jnp.sum(out, axis=-1), 1.0, atol=1e-5)
    assert jnp.allclose(out, ref, atol=5e-3), float(jnp.max(jnp.abs(out - ref)))

    # Test 2: multi-step grid with a ragged last block (no wrapper-side pad).
    B2 = 300
    x2 = jax.random.normal(kx2, (B2, INPUT_SIZE), jnp.float32)
    out2 = jax.block_until_ready(nn_forward(x2, w1p, b1p, w2p, b2p, tile_b=256))
    ref2 = _reference(x2, w1, b1, w2, b2)
    assert out2.shape == (B2, NUM_CLASSES)
    assert bool(jnp.all(jnp.isfinite(out2)))
    assert jnp.allclose(jnp.sum(out2, axis=-1), 1.0, atol=1e-5)
    assert jnp.allclose(out2, ref2, atol=5e-3), float(jnp.max(jnp.abs(out2 - ref2)))

    print("KERNEL_OK")
</pallas_src>

<mosaic_0001>
module attributes {stable_mosaic.version = 11 : i64} {
  func.func @mlp_kernel(%arg0: i32, %arg1: memref<16x784xf32, #tpu.memory_space<vmem>>, %arg2: memref<784x128xbf16, #tpu.memory_space<vmem>>, %arg3: memref<1x128xf32, #tpu.memory_space<vmem>>, %arg4: memref<128x128xbf16, #tpu.memory_space<vmem>>, %arg5: memref<1x128xf32, #tpu.memory_space<vmem>>, %arg6: memref<16x128xf32, #tpu.memory_space<vmem>>) attributes {dimension_semantics = [#tpu.dimension_semantics<parallel>], iteration_bounds = array<i64: 1>, scalar_prefetch = 0 : i64, scratch_operands = 0 : i64, tpu.core_type = #tpu.core_type<tc>, window_params = [{transform_indices = @transform_0, window_bounds = array<i64: 16, 784>}, {pipeline_mode = #tpu.pipeline_mode<synchronous>, transform_indices = @transform_1, window_bounds = array<i64: 784, 128>}, {pipeline_mode = #tpu.pipeline_mode<synchronous>, transform_indices = @transform_2, window_bounds = array<i64: 1, 128>}, {pipeline_mode = #tpu.pipeline_mode<synchronous>, transform_indices = @transform_3, window_bounds = array<i64: 128, 128>}, {pipeline_mode = #tpu.pipeline_mode<synchronous>, transform_indices = @transform_4, window_bounds = array<i64: 1, 128>}, {transform_indices = @transform_5, window_bounds = array<i64: 16, 128>}]} {
    %c0 = arith.constant 0 : index
    %c0_0 = arith.constant 0 : index
    %0 = vector.load %arg1[%c0, %c0_0] : memref<16x784xf32, #tpu.memory_space<vmem>>, vector<16x784xf32>
    %1 = arith.truncf %0 : vector<16x784xf32> to vector<16x784xbf16>
    %c0_1 = arith.constant 0 : index
    %c0_2 = arith.constant 0 : index
    %2 = vector.load %arg2[%c0_1, %c0_2] : memref<784x128xbf16, #tpu.memory_space<vmem>>, vector<784x128xbf16>
    %cst = arith.constant dense<0.000000e+00> : vector<16x128xf32>
    %3 = tpu.matmul %1, %2, %cst {dimension_numbers = #tpu.dot_dimension_numbers<[1], [0], [0], [1], [0, 0, 1, 1], [], []>} : vector<16x784xbf16>, vector<784x128xbf16>, vector<16x128xf32> -> vector<16x128xf32>
    %c0_3 = arith.constant 0 : index
    %c0_4 = arith.constant 0 : index
    %4 = vector.load %arg3[%c0_3, %c0_4] : memref<1x128xf32, #tpu.memory_space<vmem>>, vector<1x128xf32>
    %5 = vector.broadcast %4 : vector<1x128xf32> to vector<16x128xf32>
    %6 = arith.addf %3, %5 : vector<16x128xf32>
    %cst_5 = arith.constant 0.000000e+00 : f32
    %7 = vector.broadcast %cst_5 : f32 to vector<16x128xf32>
    %8 = arith.maximumf %6, %7 : vector<16x128xf32>
    %9 = arith.truncf %8 : vector<16x128xf32> to vector<16x128xbf16>
    %c0_6 = arith.constant 0 : index
    %c0_7 = arith.constant 0 : index
    %10 = vector.load %arg4[%c0_6, %c0_7] : memref<128x128xbf16, #tpu.memory_space<vmem>>, vector<128x128xbf16>
    %cst_8 = arith.constant dense<0.000000e+00> : vector<16x128xf32>
    %11 = tpu.matmul %9, %10, %cst_8 {dimension_numbers = #tpu.dot_dimension_numbers<[1], [0], [0], [1], [0, 0, 1, 1], [], []>} : vector<16x128xbf16>, vector<128x128xbf16>, vector<16x128xf32> -> vector<16x128xf32>
    %c0_9 = arith.constant 0 : index
    %c0_10 = arith.constant 0 : index
    %12 = vector.load %arg5[%c0_9, %c0_10] : memref<1x128xf32, #tpu.memory_space<vmem>>, vector<1x128xf32>
    %13 = vector.broadcast %12 : vector<1x128xf32> to vector<16x128xf32>
    %14 = arith.addf %11, %13 : vector<16x128xf32>
    %cst_11 = arith.constant dense<0xFF800000> : vector<16xf32>
    %15 = vector.multi_reduction <maximumf>, %14, %cst_11 [1] : vector<16x128xf32> to vector<16xf32>
    %16 = vector.shape_cast %15 : vector<16xf32> to vector<16x1xf32>
    %17 = vector.broadcast %16 : vector<16x1xf32> to vector<16x128xf32>
    %18 = arith.subf %14, %17 : vector<16x128xf32>
    %19 = math.exp %18 : vector<16x128xf32>
    %cst_12 = arith.constant dense<0.000000e+00> : vector<16xf32>
    %20 = vector.multi_reduction <add>, %19, %cst_12 [1] : vector<16x128xf32> to vector<16xf32>
    %21 = vector.shape_cast %20 : vector<16xf32> to vector<16x1xf32>
    %22 = tpu.reciprocal %21 {approx = true} : vector<16x1xf32> -> vector<16x1xf32>
    %23 = arith.mulf %21, %22 : vector<16x1xf32>
    %cst_13 = arith.constant 2.000000e+00 : f32
    %24 = vector.broadcast %cst_13 : f32 to vector<16x1xf32>
    %25 = arith.subf %24, %23 : vector<16x1xf32>
    %26 = arith.mulf %22, %25 : vector<16x1xf32>
    %27 = vector.broadcast %26 : vector<16x1xf32> to vector<16x128xf32>
    %28 = arith.mulf %19, %27 : vector<16x128xf32>
    %c0_14 = arith.constant 0 : index
    %c0_15 = arith.constant 0 : index
    %29 = vector.load %arg6[%c0_14, %c0_15] : memref<16x128xf32, #tpu.memory_space<vmem>>, vector<16x128xf32>
    tpu.vector_store %arg6[%c0_14, %c0_15], %28 {strides = array<i32>} : memref<16x128xf32, #tpu.memory_space<vmem>>, vector<16x128xf32>,
    return
  }
  func.func @transform_0(%arg0: i32) -> (i32, i32) {
    %c0_i32 = arith.constant 0 : i32
    %c0_i32_0 = arith.constant 0 : i32
    return %arg0, %c0_i32 : i32, i32
  }
  func.func @transform_1(%arg0: i32) -> (i32, i32) {
    %c0_i32 = arith.constant 0 : i32
    %c0_i32_0 = arith.constant 0 : i32
    %c0_i32_1 = arith.constant 0 : i32
    return %c0_i32, %c0_i32_0 : i32, i32
  }
  func.func @transform_2(%arg0: i32) -> (i32, i32) {
    %c0_i32 = arith.constant 0 : i32
    %c0_i32_0 = arith.constant 0 : i32
    %c0_i32_1 = arith.constant 0 : i32
    return %c0_i32, %c0_i32_0 : i32, i32
  }
  func.func @transform_3(%arg0: i32) -> (i32, i32) {
    %c0_i32 = arith.constant 0 : i32
    %c0_i32_0 = arith.constant 0 : i32
    %c0_i32_1 = arith.constant 0 : i32
    return %c0_i32, %c0_i32_0 : i32, i32
  }
  func.func @transform_4(%arg0: i32) -> (i32, i32) {
    %c0_i32 = arith.constant 0 : i32
    %c0_i32_0 = arith.constant 0 : i32
    %c0_i32_1 = arith.constant 0 : i32
    return %c0_i32, %c0_i32_0 : i32, i32
  }
  func.func @transform_5(%arg0: i32) -> (i32, i32) {
    %c0_i32 = arith.constant 0 : i32
    %c0_i32_0 = arith.constant 0 : i32
    return %arg0, %c0_i32 : i32, i32
  }
}

</mosaic_0001>

<bundles_post_ra>
// kernel: tpu_custom_call.1
= control target key start
LH: loop header
LB: loop body
LE: loop exit
PB: predicated region body
PF: predicated region fallthrough
CT: control target
= control target key end

     0   :  { %10 = vsyncpa [#allocation3], 0  ;;  %s1259_s0 = inlined_call_operand.hbm [shape: f32[8,784], index: 0, kind: input, shape index: {}]   ;;  %s1260_s1 = inlined_call_operand.hbm [shape: bf16[784,128], index: 1, kind: input, shape index: {}]   ;;  %s1261_s2 = inlined_call_operand.vmem [shape: f32[1,128], index: 2, kind: input, shape index: {}]   ;;  %s1262_s3 = inlined_call_operand.hbm [shape: bf16[128,128], index: 3, kind: input, shape index: {}]   ;;  %s1263_s4 = inlined_call_operand.vmem [shape: f32[1,128], index: 4, kind: input, shape index: {}]   ;;  %s1264_s5 = inlined_call_operand.hbm [shape: f32[8,128], index: 5, kind: output, shape index: {}]  }
   0x1   :  { %11 = vsyncpa [#allocation6], 0 }
   0x2   :  { %12 = vsyncpa [#allocation4], 0 }
   0x3   :  { %17 = vsyncadd [#allocation3], 896  ;;  %s1144_s18 = smov [#allocation5]   ;;  %s1050_s22 = scalar_lea.hbm %s1260_s1, 6272 }
   0x4   :  { %s30_s19 = sshll.u32 %s1144_s18, 4  ;;  %p1051_p0 = scmp.ne.s32.totalorder %s1260_s1, %s1050_s22  ;;  %s31_s19 = int_to_ptr.vmem [resolvable:$true] %s30_s19 }
   0x5   :  { %p1054_p1 = scmp.lt.u32.totalorder %s1050_s22, %s1260_s1 }
   0x7   :  { %p1056_p2 = pnand %p1054_p1, %p1051_p0 }
   0x9   :  { %1059 = shalt.err (!%p1056_p2)
}
   0xa   :  { %s1060_s27 = scalar_lea.vmem %s31_s19, 6272  ;;  %p1065_p4 = scmp.lt.s32.totalorder %s31_s19, %s31_s19 }
   0xb   :  { %p1061_p3 = scmp.ne.s32.totalorder %s31_s19, %s1060_s27  ;;  %p1066_p5 = scmp.lt.s32.totalorder %s1060_s27, %s1060_s27 }
   0xd   :  { %p1067_p6 = por %p1066_p5, %p1065_p4 }
   0xf   :  { %p1068_p7 = pnand %p1067_p6, %p1061_p3 }
  0x11   :  { %1071 = shalt.err (!%p1068_p7)
}
  0x12   :  { %s1145_s28 = smov 64   ;;  %s1146_s29 = smov 4  }
  0x13   :  { %36 = dma.hbm_to_vmem [thread:$0]  %s1260_s1, 6272, %s31_s19, [#allocation6], %s1145_s28, %s1145_s28, %s1146_s29  }
  0x14   :  { %s1147_s7 = smov [#allocation2]   ;;  %s1072_s11 = scalar_lea.hbm %s1259_s0, 896 }
  0x15   :  { %s18_s8 = sshll.u32 %s1147_s7, 4  ;;  %p1073_p8 = scmp.ne.s32.totalorder %s1259_s0, %s1072_s11  ;;  %s19_s8 = int_to_ptr.vmem [resolvable:$true] %s18_s8 }
  0x16   :  { %p1076_p9 = scmp.lt.u32.totalorder %s1072_s11, %s1259_s0 }
  0x18   :  { %p1078_p10 = pnand %p1076_p9, %p1073_p8 }
  0x1a   :  { %1081 = shalt.err (!%p1078_p10)
}
  0x1b   :  { %s1082_s16 = scalar_lea.vmem %s19_s8, 896  ;;  %s1086_s1 = scalar_lea.vmem %s19_s8, 1792 }
  0x1c   :  { %p1083_p11 = scmp.ne.s32.totalorder %s19_s8, %s1082_s16  ;;  %p1087_p12 = scmp.lt.s32.totalorder %s19_s8, %s19_s8 }
  0x1d   :  { %p1088_p13 = scmp.lt.s32.totalorder %s1086_s1, %s1082_s16 }
  0x1f   :  { %p1089_p0 = por %p1088_p13, %p1087_p12 }
  0x21   :  { %p1090_p1 = pnand %p1089_p0, %p1083_p11 }
  0x23   :  { %1093 = shalt.err (!%p1090_p1)
}
  0x24   :  { %s1148_s17 = smov 896   ;;  %s1149_s18 = smov 56  }
  0x25   :  { %24 = dma.hbm_to_vmem [thread:$0]  %s1259_s0, 896, %s19_s8, [#allocation3], %s1148_s17, %s1148_s17, %s1149_s18  }
  0x26   :  { %s1150_s21 = smov [#allocation7]   ;;  %s1094_s25 = scalar_lea.hbm %s1262_s3, 1024 }
  0x27   :  { %s44_s22 = sshll.u32 %s1150_s21, 4  ;;  %p1095_p2 = scmp.ne.s32.totalorder %s1262_s3, %s1094_s25  ;;  %s45_s22 = int_to_ptr.vmem [resolvable:$true] %s44_s22 }
  0x28   :  { %p1098_p3 = scmp.lt.u32.totalorder %s1094_s25, %s1262_s3 }
  0x2a   :  { %p1100_p4 = pnand %p1098_p3, %p1095_p2 }
  0x2c   :  { %1103 = shalt.err (!%p1100_p4)
}
  0x2d   :  { %s1104_s7 = scalar_lea.vmem %s45_s22, 1024  ;;  %p1109_p6 = scmp.lt.s32.totalorder %s45_s22, %s45_s22 }
  0x2e   :  { %p1105_p5 = scmp.ne.s32.totalorder %s45_s22, %s1104_s7  ;;  %p1110_p7 = scmp.lt.s32.totalorder %s1104_s7, %s1104_s7 }
  0x30   :  { %p1111_p8 = por %p1110_p7, %p1109_p6 }
  0x32   :  { %p1112_p9 = pnand %p1111_p8, %p1105_p5 }
  0x34   :  { %1115 = shalt.err (!%p1112_p9)
}
  0x35   :  { %50 = dma.hbm_to_vmem [thread:$0]  %s1262_s3, 1024, %s45_s22, [#allocation6], %s1145_s28, %s1145_s28, %s1146_s29  }
  0x36   :  { %1138 = dma.done.wait [#allocation3], 1792  }
  0x37   :  { %1139 = vsyncadd [#allocation3], 4294965504 }
  0x38   :  { %1140 = dma.done.wait [#allocation6], 7296  }
  0x39   :  { %1141 = vsyncadd [#allocation6], 4294960000  ;;  %v985_v0 = vld [vmem:[#allocation5 + $0x40] sm:$0xff]   ;;  %v989_v4 = vld [vmem:[#allocation5 + $0x48] sm:$0xff]   ;;  %v1151_v43 = vmov 0.0   ;;  %vm1152_vm0 = vmmov 0  }
  0x3a   :  { %v986_v1 = vld [vmem:[#allocation5] sm:$0xff]   ;;  %870 = vmatprep.subr.bf16.mxu0 %v985_v0  ;;  %v990_v5 = vld [vmem:[#allocation5 + $0x8] sm:$0xff]   ;;  %v993_v8 = vld [vmem:[#allocation5 + $0x50] sm:$0xff]   ;;  %vm483_vm1 = vcmask 130048  }
  0x3b   :  { %v987_v2 = vld [vmem:[#allocation5 + $0xc0] sm:$0xff]   ;;  %871 = vmatpush3.bf16.msra.mxu0 %v986_v1  ;;  %v991_v6 = vld [vmem:[#allocation5 + $0xc8] sm:$0xff]   ;;  %v994_v9 = vld [vmem:[#allocation5 + $0x10] sm:$0xff]  }
  0x3c   :  { %v988_v3 = vld [vmem:[#allocation5 + $0x80] sm:$0xff]   ;;  %892 = vmatprep.subr.bf16.mxu1 %v987_v2  ;;  %872 = vmatprep.subr.bf16.mxu0 %v989_v4  ;;  %v992_v7 = vld [vmem:[#allocation5 + $0x88] sm:$0xff]   ;;  %v995_v10 = vld [vmem:[#allocation5 + $0xd0] sm:$0xff]  }
  0x3d   :  { %893 = vmatpush3.bf16.msra.mxu1 %v988_v3  ;;  %v996_v11 = vld [vmem:[#allocation5 + $0x90] sm:$0xff]   ;;  %v997_v12 = vld [vmem:[#allocation5 + $0x58] sm:$0xff]   ;;  %v1001_v16 = vld [vmem:[#allocation5 + $0x60] sm:$0xff]  }
  0x3e   :  { %894 = vmatprep.subr.bf16.mxu1 %v991_v6  ;;  %v998_v13 = vld [vmem:[#allocation5 + $0x18] sm:$0xff]   ;;  %v1002_v17 = vld [vmem:[#allocation5 + $0x20] sm:$0xff]   ;;  %v1005_v20 = vld [vmem:[#allocation5 + $0x68] sm:$0xff]  }
  0x3f   :  { %873 = vmatpush3.bf16.msra.mxu0 %v990_v5  ;;  %v999_v14 = vld [vmem:[#allocation5 + $0xd8] sm:$0xff]   ;;  %v1003_v18 = vld [vmem:[#allocation5 + $0xe0] sm:$0xff]   ;;  %v1006_v21 = vld [vmem:[#allocation5 + $0x28] sm:$0xff]  }
  0x40   :  { %874 = vmatprep.subr.bf16.mxu0 %v993_v8  ;;  %v1000_v15 = vld [vmem:[#allocation5 + $0x98] sm:$0xff]   ;;  %v1004_v19 = vld [vmem:[#allocation5 + $0xa0] sm:$0xff]   ;;  %v1007_v22 = vld [vmem:[#allocation5 + $0xe8] sm:$0xff]  }
  0x41   :  { %895 = vmatpush3.bf16.msra.mxu1 %v992_v7  ;;  %v1008_v23 = vld [vmem:[#allocation5 + $0xa8] sm:$0xff]   ;;  %v1009_v24 = vld [vmem:[#allocation5 + $0x70] sm:$0xff]   ;;  %v1013_v28 = vld [vmem:[#allocation5 + $0x78] sm:$0xff]  }
  0x42   :  { %896 = vmatprep.subr.bf16.mxu1 %v995_v10  ;;  %v1010_v25 = vld [vmem:[#allocation5 + $0x30] sm:$0xff]   ;;  %v1014_v29 = vld [vmem:[#allocation5 + $0x38] sm:$0xff]   ;;  %v70_v36 = vld [vmem:[#allocation2 + $0x38] sm:$0xff] }
  0x43   :  { %875 = vmatpush3.bf16.msra.mxu0 %v994_v9  ;;  %v1011_v26 = vld [vmem:[#allocation5 + $0xf0] sm:$0xff]   ;;  %v1015_v30 = vld [vmem:[#allocation5 + $0xf8] sm:$0xff]   ;;  %v1017_v38 = vld [vmem:[#allocation5 + $0x140] sm:$0xff]  }
  0x44   :  { %876 = vmatprep.subr.bf16.mxu0 %v997_v12  ;;  %v1012_v27 = vld [vmem:[#allocation5 + $0xb0] sm:$0xff]   ;;  %v64_v31 = vld [vmem:[#allocation2 + $0x8] sm:$0xff]  ;;  %v66_v39 = vld [vmem:[#allocation2 + $0x18] sm:$0xff] }
  0x45   :  { %897 = vmatpush3.bf16.msra.mxu1 %v996_v11  ;;  %v71_v32 = vld [vmem:[#allocation2 + $0x40] sm:$0xff]  ;;  %v1016_v34 = vld [vmem:[#allocation5 + $0xb8] sm:$0xff]   ;;  %v73_v40 = vld [vmem:[#allocation2 + $0x50] sm:$0xff] }
  0x46   :  { %898 = vmatprep.subr.bf16.mxu1 %v999_v14  ;;  %v78_v33 = vpack.c.bf16 %v71_v32, %v64_v31  ;;  %v63_v35 = vld [vmem:[#allocation2] sm:$0xff]  ;;  %v80_v41 = vpack.c.bf16 %v73_v40, %v66_v39  ;;  %v1018_v42 = vld [vmem:[#allocation5 + $0x100] sm:$0xff]   ;;  %v72_v45 = vld [vmem:[#allocation2 + $0x48] sm:$0xff] }
  0x47   :  { %877 = vmatpush3.bf16.msra.mxu0 %v998_v13  ;;  %v77_v37 = vpack.c.bf16 %v70_v36, %v63_v35  ;;  %v65_v44 = vld [vmem:[#allocation2 + $0x10] sm:$0xff]  ;;  %v1019_v47 = vld [vmem:[#allocation5 + $0x148] sm:$0xff]   ;;  %v1021_v49 = vld [vmem:[#allocation5 + $0x150] sm:$0xff]  }
  0x48   :  { %878 = vmatprep.subr.bf16.mxu0 %v1001_v16  ;;  %519 = vmatprep.mubr.bf16.mxu0 %v78_v33  ;;  %v79_v46 = vpack.c.bf16 %v72_v45, %v65_v44  ;;  %v1020_v48 = vld [vmem:[#allocation5 + $0x108] sm:$0xff]   ;;  %v1022_v50 = vld [vmem:[#allocation5 + $0x110] sm:$0xff]   ;;  %v1023_v51 = vld [vmem:[#allocation5 + $0x158] sm:$0xff]  }
  0x49   :  { %899 = vmatpush3.bf16.msra.mxu1 %v1000_v15  ;;  %560 = vmatprep.mubr.bf16.mxu1 %v80_v41  ;;  %v1024_v52 = vld [vmem:[#allocation5 + $0x118] sm:$0xff]   ;;  %v1025_v53 = vld [vmem:[#allocation5 + $0x160] sm:$0xff]   ;;  %v1027_v55 = vld [vmem:[#allocation5 + $0x168] sm:$0xff]  }
  0x4a   :  { %900 = vmatprep.subr.bf16.mxu1 %v1003_v18  ;;  %v1026_v54 = vld [vmem:[#allocation5 + $0x120] sm:$0xff]   ;;  %v68_v57 = vld [vmem:[#allocation2 + $0x28] sm:$0xff]  ;;  %v1028_v58 = vld [vmem:[#allocation5 + $0x128] sm:$0xff]  }
  0x4b   :  { %879 = vmatpush3.bf16.msra.mxu0 %v1002_v17  ;;  %v1033_v56 = vld [vmem:[#allocation5 + $0x180] sm:$0xff]   ;;  %v1029_v59 = vld [vmem:[#allocation5 + $0x170] sm:$0xff]   ;;  %v76_v63 = vld [vmem:[#allocation2 + $0x68] sm:$0xff] }
  0x4c   :  { %880 = vmatprep.subr.bf16.mxu0 %v1005_v20  ;;  %v75_v60 = vld [vmem:[#allocation2 + $0x60] sm:$0xff]  ;;  %v69_v62 = vld [vmem:[#allocation2 + $0x30] sm:$0xff]  ;;  %v1031_v2 = vld [vmem:[#allocation5 + $0x178] sm:$0xff]  }
  0x4d   :  { %901 = vmatpush3.bf16.msra.mxu1 %v1004_v19  ;;  %v82_v61 = vpack.c.bf16 %v75_v60, %v68_v57  ;;  %v83_v0 = vpack.c.bf16 %v76_v63, %v69_v62  ;;  %v1030_v1 = vld [vmem:[#allocation5 + $0x130] sm:$0xff]   ;;  %v1032_v3 = vld [vmem:[#allocation5 + $0x138] sm:$0xff]   ;;  %v74_v5 = vld [vmem:[#allocation2 + $0x58] sm:$0xff] }
  0x4e   :  { %902 = vmatprep.subr.bf16.mxu1 %v1007_v22  ;;  %v67_v4 = vld [vmem:[#allocation2 + $0x20] sm:$0xff]  ;;  %v1034_v7 = vld [vmem:[#allocation7] sm:$0xff]   ;;  %v1036_v9 = vld [vmem:[#allocation7 + $0x10] sm:$0xff]  }
  0x4f   :  { %881 = vmatpush3.bf16.msra.mxu0 %v1006_v21  ;;  %v81_v6 = vpack.c.bf16 %v74_v5, %v67_v4  ;;  %v1035_v8 = vld [vmem:[#allocation7 + $0x8] sm:$0xff]   ;;  %v1037_v10 = vld [vmem:[#allocation7 + $0x18] sm:$0xff]   ;;  %v1038_v11 = vld [vmem:[#allocation7 + $0x20] sm:$0xff]  }
  0x50   :  { %882 = vmatprep.subr.bf16.mxu0 %v1009_v24  ;;  %v1039_v12 = vld [vmem:[#allocation7 + $0x28] sm:$0xff]   ;;  %v1040_v13 = vld [vmem:[#allocation7 + $0x30] sm:$0xff]   ;;  %v1041_v14 = vld [vmem:[#allocation7 + $0x38] sm:$0xff]  }
  0x51   :  { %903 = vmatpush3.bf16.msra.mxu1 %v1008_v23  ;;  %v810_v16 = vld [vmem:[%s1261_s2] ss:$0 sm:$0xff] }
  0x52   :  { %904 = vmatprep.subr.bf16.mxu1 %v1011_v26 }
  0x53   :  { %883 = vmatpush3.bf16.msra.mxu0 %v1010_v25 }
  0x54   :  { %884 = vmatprep.subr.bf16.mxu0 %v1013_v28 }
  0x55   :  { %905 = vmatpush3.bf16.msra.mxu1 %v1012_v27 }
  0x56   :  { %906 = vmatprep.subr.bf16.mxu1 %v1015_v30 }
  0x57   :  { %885 = vmatpush3.bf16.msra.mxu0 %v1014_v29 }
  0x58   :  { %914 = vmatprep.subr.bf16.mxu0 %v1017_v38 }
  0x59   :  { %907 = vmatpush3.bf16.msra.mxu1 %v1016_v34 }
  0x5a   :  { %947 = vmatprep.subr.bf16.mxu1 %v1151_v43  ;;  %520 = vmatmul.mubr.bf16.vlgmr.msra.gmra.mrb[0].mxu0 %v77_v37 }
  0x5b   :  { %915 = vmatpush3.bf16.msra.mxu0 %v1018_v42  ;;  %601 = vmatprep.mubr.bf16.mxu0 %v82_v61 }
  0x5c   :  { %561 = vmatmul.mubr.bf16.vlgmr.msra.gmra.mrb[0].mxu1 %v79_v46  ;;  %916 = vmatprep.subr.bf16.mxu0 %v1019_v47 }
  0x5d   :  { %949 = vmatprep.mubr.msk.bf16.mxu1 %vm1152_vm0, %v1151_v43  ;;  %948 = vmatpush3.bf16.msra.mxu1 %v1033_v56 }
  0x5e   :  { %953 = vmatprep.subr.bf16.mxu1 %v1151_v43 }
  0x5f   :  { %917 = vmatpush3.bf16.msra.mxu0 %v1020_v48 }
  0x60   :  { %918 = vmatprep.subr.bf16.mxu0 %v1021_v49  ;;  %v861_v49 = vld [vmem:[%s1263_s4] ss:$0 sm:$0xff] }
  0x63   :  { %919 = vmatpush3.bf16.msra.mxu0 %v1022_v50 }
  0x64   :  { %920 = vmatprep.subr.bf16.mxu0 %v1023_v51  ;;  %950 = vmatmul.mubr.msk.bf16.vlgmr.msra.gmra.mrb[4].mxu1 %vm483_vm1, %v83_v0 }
  0x65   :  { %969 = vmatprep.mubr.msk.bf16.mxu1 %vm1152_vm0, %v1151_v43  ;;  %954 = vmatpush3.bf16.msra.mxu1 %v1034_v7 }
  0x66   :  { %955 = vmatprep.subr.bf16.mxu1 %v1151_v43 }
  0x67   :  { %921 = vmatpush3.bf16.msra.mxu0 %v1024_v52 }
  0x68   :  { %922 = vmatprep.subr.bf16.mxu0 %v1025_v53 }
  0x69   :  { %956 = vmatpush3.bf16.msra.mxu1 %v1035_v8 }
  0x6a   :  { %957 = vmatprep.subr.bf16.mxu1 %v1151_v43 }
  0x6b   :  { %923 = vmatpush3.bf16.msra.mxu0 %v1026_v54 }
  0x6c   :  { %924 = vmatprep.subr.bf16.mxu0 %v1027_v55 }
  0x6d   :  { %958 = vmatpush3.bf16.msra.mxu1 %v1036_v9 }
  0x6e   :  { %959 = vmatprep.subr.bf16.mxu1 %v1151_v43 }
  0x6f   :  { %925 = vmatpush3.bf16.msra.mxu0 %v1028_v58 }
  0x70   :  { %926 = vmatprep.subr.bf16.mxu0 %v1029_v59 }
  0x71   :  { %960 = vmatpush3.bf16.msra.mxu1 %v1037_v10 }
  0x72   :  { %961 = vmatprep.subr.bf16.mxu1 %v1151_v43 }
  0x73   :  { %927 = vmatpush3.bf16.msra.mxu0 %v1030_v1 }
  0x74   :  { %928 = vmatprep.subr.bf16.mxu0 %v1031_v2 }
  0x75   :  { %962 = vmatpush3.bf16.msra.mxu1 %v1038_v11 }
  0x76   :  { %963 = vmatprep.subr.bf16.mxu1 %v1151_v43 }
  0x77   :  { %929 = vmatpush3.bf16.msra.mxu0 %v1032_v3 }
  0x79   :  { %964 = vmatpush3.bf16.msra.mxu1 %v1039_v12 }
  0x7a   :  { %602 = vmatmul.mubr.bf16.vlgmr.msra.gmra.mrb[4].mxu0 %v81_v6  ;;  %965 = vmatprep.subr.bf16.mxu1 %v1151_v43 }
  0x7d   :  { %966 = vmatpush3.bf16.msra.mxu1 %v1040_v13 }
  0x7e   :  { %967 = vmatprep.subr.bf16.mxu1 %v1151_v43 }
  0x81   :  { %968 = vmatpush3.bf16.msra.mxu1 %v1041_v14 }
 0x12d   :  { %v886_v15 = vpop.f32.mrb[0].mxu0 }
 0x12e   :  { %v887_v17 = vpop.f32.mrb[1].mxu0 }
 0x12f   :  { %v888_v18 = vadd.f32 %v887_v17, %v886_v15  ;;  %v889_v19 = vpop.f32.mrb[2].mxu0  ;;  %v908_v20 = vpop.f32.mrb[0].mxu1 }
 0x130   :  { %v890_v21 = vpop.f32.mrb[3].mxu0  ;;  %v909_v24 = vpop.f32.mrb[1].mxu1 }
 0x131   :  { %v522_v22 = vadd.f32 %v888_v18, %v810_v16  ;;  %v891_v23 = vadd.f32 %v890_v21, %v889_v19  ;;  %v910_v25 = vadd.f32 %v909_v24, %v908_v20  ;;  %v911_v26 = vpop.f32.mrb[2].mxu1 }
 0x132   :  { %v912_v28 = vpop.f32.mrb[3].mxu1 }
 0x133   :  { %v525_v27 = vadd.f32 %v891_v23, %v810_v16  ;;  %v563_v29 = vadd.f32 %v910_v25, %v522_v22  ;;  %v913_v30 = vadd.f32 %v912_v28, %v911_v26 }
 0x135   :  { %v566_v31 = vadd.f32 %v913_v30, %v525_v27 }
 0x137   :  { %v644_v32 = vpop.f32.mrb[4].mxu1 }
 0x138   :  { %v951_v33 = vpop.f32.mrb[5].mxu1 }
 0x139   :  { %v647_v34 = vpop.f32.mrb[6].mxu1 }
 0x13a   :  { %v952_v35 = vpop.f32.mrb[7].mxu1 }
 0x14d   :  { %v930_v36 = vpop.f32.mrb[4].mxu0 }
 0x14e   :  { %v931_v37 = vpop.f32.mrb[5].mxu0 }
 0x14f   :  { %v932_v38 = vadd.f32 %v931_v37, %v930_v36  ;;  %v933_v39 = vpop.f32.mrb[6].mxu0 }
 0x150   :  { %v934_v40 = vpop.f32.mrb[7].mxu0 }
 0x151   :  { %v604_v41 = vadd.f32 %v932_v38, %v563_v29  ;;  %v935_v42 = vadd.f32 %v934_v40, %v933_v39 }
 0x153   :  { %v645_v43 = vadd.f32 %v644_v32, %v604_v41  ;;  %v607_v44 = vadd.f32 %v935_v42, %v566_v31 }
 0x155   :  { %v648_v45 = vadd.f32 %v647_v34, %v607_v44  ;;  %v651_v46 = vmax.f32 %v645_v43, 0.0 }
 0x157   :  { %v652_v47 = vmax.f32 %v648_v45, 0.0 }
 0x159   :  { %v653_v48 = vpack.c.bf16 %v652_v47, %v651_v46 }
 0x15b   :  { %970 = vmatmul.mubr.bf16.vlgmr.msra.gmra.mrb[8].mxu1 %v653_v48 }
 0x22e   :  { %v759_v50 = vpop.f32.mrb[8].mxu1 }
 0x22f   :  { %v760_v51 = vadd.f32 %v861_v49, %v759_v50  ;;  %v971_v52 = vpop.f32.mrb[9].mxu1 }
 0x230   :  { %v762_v53 = vpop.f32.mrb[10].mxu1 }
 0x231   :  { %766 = vmax.xlane.f32.xlu0 %v760_v51  ;;  %v972_v54 = vpop.f32.mrb[11].mxu1  ;;  %v763_v55 = vadd.f32 %v861_v49, %v762_v53 }
 0x235   :  { %768 = vmax.xlane.f32.xlu0 %v763_v55 }
 0x2be   :  { %v767_v56 = vpop.xlane.xlu0 %766 }
 0x2bf   :  { %v770_v57 = vsub.f32 %v760_v51, %v767_v56 }
 0x2c1   :  { %v772_v58 = vmul.f32 1.442695, %v770_v57 }
 0x2c2   :  { %v769_v59 = vpop.xlane.xlu0 %768 }
 0x2c3   :  { %1042 = vpow2.f32 %v772_v58  ;;  %v771_v60 = vsub.f32 %v763_v55, %v769_v59 }
 0x2c5   :  { %v774_v61 = vmul.f32 1.442695, %v771_v60 }
 0x2c7   :  { %1044 = vpow2.f32 %v774_v61 }
 0x2cd   :  { %v1043_v62 = vpop.eup %1042 }
 0x2ce   :  { %776 = vadd.xlane.f32.xlu1 %v1043_v62 }
 0x2d1   :  { %v1045_v63 = vpop.eup %1044 }
 0x2d2   :  { %778 = vadd.xlane.f32.xlu1 %v1045_v63 }
 0x35b   :  { %v777_v0 = vpop.xlane.xlu1 %776 }
 0x35c   :  { %1046 = vrcp.f32 %v777_v0 }
 0x35f   :  { %v779_v1 = vpop.xlane.xlu1 %778 }
 0x360   :  { %1048 = vrcp.f32 %v779_v1 }
 0x366   :  { %v1047_v2 = vpop.eup %1046 }
 0x367   :  { %v782_v3 = vmul.f32 %v1047_v2, %v777_v0 }
 0x369   :  { %v784_v4 = vsub.f32 2.0, %v782_v3 }
 0x36a   :  { %v1049_v5 = vpop.eup %1048 }
 0x36b   :  { %v786_v6 = vmul.f32 %v1047_v2, %v784_v4  ;;  %v783_v7 = vmul.f32 %v1049_v5, %v779_v1 }
 0x36d   :  { %v788_v8 = vmul.f32 %v1043_v62, %v786_v6  ;;  %v785_v9 = vsub.f32 2.0, %v783_v7 }
 0x36f   :  { %790 = vst [vmem:[#allocation8] sm:$0xff] %v788_v8  ;;  %v787_v10 = vmul.f32 %v1049_v5, %v785_v9 }
 0x371   :  { %v789_v11 = vmul.f32 %v1045_v63, %v787_v10 }
 0x373   :  { %791 = vst [vmem:[#allocation8 + $0x8] sm:$0xff] %v789_v11 }
 0x374   :  { %796 = vsyncadd [#allocation4], 128  ;;  %s1153_s4 = smov [#allocation8]  }
 0x375   :  { %s797_s9 = sshll.u32 %s1153_s4, 4  ;;  %s798_s9 = int_to_ptr.vmem [resolvable:$true] %s797_s9 }
 0x376   :  { %s1116_s10 = scalar_lea.vmem %s798_s9, 128  ;;  %s1120_s11 = scalar_lea.vmem %s798_s9, 256 }
 0x377   :  { %p1117_p10 = scmp.ne.s32.totalorder %s798_s9, %s1116_s10  ;;  %p1121_p11 = scmp.lt.s32.totalorder %s798_s9, %s798_s9 }
 0x378   :  { %p1122_p12 = scmp.lt.s32.totalorder %s1120_s11, %s1116_s10 }
 0x37a   :  { %p1123_p13 = por %p1122_p12, %p1121_p11 }
 0x37c   :  { %p1124_p0 = pnand %p1123_p13, %p1117_p10 }
 0x37e   :  { %1127 = shalt.err (!%p1124_p0)
}
 0x37f   :  { %s1128_s14 = scalar_lea.hbm %s1264_s5, 128 }
 0x380   :  { %p1129_p1 = scmp.ne.s32.totalorder %s1264_s5, %s1128_s14  ;;  %p1132_p2 = scmp.lt.u32.totalorder %s1128_s14, %s1264_s5 }
 0x382   :  { %p1134_p3 = pnand %p1132_p2, %p1129_p1 }
 0x384   :  { %1137 = shalt.err (!%p1134_p3)
}
 0x385   :  { %s1154_s18 = smov 128   ;;  %s1155_s19 = smov 8  }
 0x386   :  { %803 = dma.vmem_to_hbm [thread:$0]  %s798_s9, 128, %s1264_s5, [#allocation4], %s1154_s18, %s1154_s18, %s1155_s19  }
 0x387   :  { %1142 = dma.done.wait [#allocation4], 256  }
 0x388   :  { %1143 = vsyncadd [#allocation4], 4294967040 }
 0x389   :  { %807 = vsyncpa [#allocation3], 1 }
 0x38a   :  { %808 = vsyncpa [#allocation6], 1 }
 0x38b   :  { %809 = vsyncpa [#allocation4], 1 }

</bundles_post_ra>
